<compile_context>
chip_gen: v6e
topology: v6e:2x2x1
jax: 0.10.0
libtpu: 0.0.40
codegen_flags: <defaults>
</compile_context>

<pallas_src>
import functools

import jax
import jax.numpy as jnp
from jax import lax
from jax.experimental import pallas as pl
from jax.experimental.pallas import tpu as pltpu

H = 20
D_IN = 4
D_OUT = 20

# dot_general dimension numbers for 2-D operands (no batch dims).
_NT = (((1,), (1,)), ((), ()))   # A @ B^T : contract lhs dim 1 with rhs dim 1
_TN = (((0,), (0,)), ((), ()))   # A^T @ B : contract lhs dim 0 with rhs dim 0


def _softplus(x):
    # torch.nn.Softplus(beta=1, threshold=20): x if x > 20 else log(1 + exp(x)).
    # Forward-only: the unselected exp branch stays finite (or inf, never NaN).
    return jnp.where(x > 20.0, x, jnp.log1p(jnp.exp(x)))


def _mlp_kernel(x_ref, w1_ref, b1_ref, w2_ref, b2_ref, w3_ref, b3_ref,
                w4t_ref, b4_ref, o_ref):
    x = x_ref[...]                                                    # (bn, D_IN)
    # Layer 1: (H, D_IN) x (bn, D_IN)^T -> (H, bn); batch lands on the lane axis.
    h = lax.dot_general(w1_ref[...], x, _NT,
                        preferred_element_type=jnp.float32) + b1_ref[...]
    h = _softplus(h)                                                  # (H, bn)
    h = jnp.dot(w2_ref[...], h, preferred_element_type=jnp.float32) + b2_ref[...]
    h = _softplus(h)
    h = jnp.dot(w3_ref[...], h, preferred_element_type=jnp.float32) + b3_ref[...]
    h = _softplus(h)
    # Layer 4: (H, bn)^T x (H, D_OUT) -> (bn, D_OUT); output already in natural layout.
    out = lax.dot_general(h, w4t_ref[...], _TN,
                          preferred_element_type=jnp.float32) + b4_ref[...]
    o_ref[...] = out.astype(o_ref.dtype)                              # (bn, D_OUT)


@functools.partial(jax.jit, static_argnames=("block_n",))
def model_latent_f(x, params, *, block_n=None):
    """x: (N, D_IN) float32.  params: PyTorch-convention (out, in) weights, (out,) biases."""
    n, d_in = x.shape
    assert d_in == D_IN

    if block_n is None:
        # >= 2 grid steps so both v7x TensorCores get work; cap at 1024 to keep
        # the (20, block_n) f32 activations inside the 64-vreg file (no spills).
        block_n = max(128, min(1024, ((n // 2) // 128) * 128))
    n_blocks = pl.cdiv(n, block_n)
    n_pad = n_blocks * block_n
    xp = jnp.pad(x, ((0, n_pad - n), (0, 0))) if n_pad != n else x

    # PyTorch (out, in) weights used natively; b1..b3 become columns (broadcast
    # along lanes); w4 is pre-transposed to (H, D_OUT) and b4 becomes a row so
    # the last layer writes the (bn, D_OUT) tile directly.
    w1 = params["w1"]; b1 = params["b1"].reshape(H, 1)     # (H, D_IN), (H, 1)
    w2 = params["w2"]; b2 = params["b2"].reshape(H, 1)     # (H, H),    (H, 1)
    w3 = params["w3"]; b3 = params["b3"].reshape(H, 1)
    w4t = params["w4"].T; b4 = params["b4"].reshape(1, D_OUT)  # (H, D_OUT), (1, D_OUT)

    # Tiny parameter tensors: whole-array VMEM residents, no per-step pipelining.
    resident = pl.BlockSpec(memory_space=pltpu.MemorySpace.VMEM)

    param_bytes = 4 * (H * D_IN + 2 * H * H + D_OUT * H + 3 * H + D_OUT)
    cost = pl.CostEstimate(
        flops=2 * n_pad * (D_IN * H + H * H + H * H + H * D_OUT),
        transcendentals=2 * 3 * H * n_pad,                  # exp + log1p per hidden elem
        bytes_accessed=4 * n_pad * (D_IN + D_OUT) + param_bytes,
    )

    out = pl.pallas_call(
        _mlp_kernel,
        out_shape=jax.ShapeDtypeStruct((n_pad, D_OUT), jnp.float32),
        grid_spec=pltpu.PrefetchScalarGridSpec(
            num_scalar_prefetch=0,
            grid=(n_blocks,),
            in_specs=[
                pl.BlockSpec((block_n, D_IN), lambda i: (i, 0)),   # x, natural layout
                resident, resident,                                # w1, b1
                resident, resident,                                # w2, b2
                resident, resident,                                # w3, b3
                resident, resident,                                # w4t, b4
            ],
            out_specs=pl.BlockSpec((block_n, D_OUT), lambda i: (i, 0)),
        ),
        compiler_params=pltpu.CompilerParams(
            # TODO(synk): verify in the Mosaic dump / xprof that "parallel" really
            # shards the batch grid across both v7x TensorCores.
            dimension_semantics=("parallel",)),
        cost_estimate=cost,
    )(xp, w1, b1, w2, b2, w3, b3, w4t, b4)

    return out[:n]                                          # (N, D_OUT)


def init_params(key):
    """Deterministic synthetic init, PyTorch nn.Linear shape convention (out, in)."""
    ks = jax.random.split(key, 8)
    def lin(kw, kb, fan_in, fan_out):
        bound = 1.0 / jnp.sqrt(float(fan_in))
        w = jax.random.uniform(kw, (fan_out, fan_in), jnp.float32, -bound, bound)
        b = jax.random.uniform(kb, (fan_out,), jnp.float32, -bound, bound)
        return w, b
    w1, b1 = lin(ks[0], ks[1], D_IN, H)
    w2, b2 = lin(ks[2], ks[3], H, H)
    w3, b3 = lin(ks[4], ks[5], H, H)
    w4, b4 = lin(ks[6], ks[7], H, D_OUT)
    return dict(w1=w1, b1=b1, w2=w2, b2=b2, w3=w3, b3=b3, w4=w4, b4=b4)


def _reference(x, p):
    def sp(v):
        return jnp.where(v > 20.0, v, jnp.log1p(jnp.exp(v)))
    h = sp(x @ p["w1"].T + p["b1"])
    h = sp(h @ p["w2"].T + p["b2"])
    h = sp(h @ p["w3"].T + p["b3"])
    return h @ p["w4"].T + p["b4"]


if __name__ == "__main__":
    key = jax.random.PRNGKey(0)
    kx, kp = jax.random.split(key)
    params = init_params(kp)

    # Small demo batch; auto block sizing picks block_n=128 -> 2 grid steps.
    N = 256
    x = jax.random.normal(kx, (N, D_IN), jnp.float32)
    y = model_latent_f(x, params)
    jax.block_until_ready(y)
    y_ref = _reference(x, params)
    assert y.shape == (N, D_OUT)
    assert jnp.allclose(y, y_ref, atol=1e-5, rtol=1e-5), "mismatch vs reference"

    # Ragged batch (exercises the row-padding path) with an explicit block_n.
    N2 = 200
    x2 = jax.random.normal(kx, (N2, D_IN), jnp.float32)
    y2 = model_latent_f(x2, params, block_n=128)
    jax.block_until_ready(y2)
    assert y2.shape == (N2, D_OUT)
    assert jnp.allclose(y2, _reference(x2, params), atol=1e-5, rtol=1e-5), "ragged mismatch"

    print("KERNEL_OK")
</pallas_src>

<mosaic_0001>
module attributes {stable_mosaic.version = 11 : i64} {
  func.func @_mlp_kernel(%arg0: i32, %arg1: memref<128x4xf32, #tpu.memory_space<vmem>>, %arg2: memref<20x4xf32, #tpu.memory_space<vmem>>, %arg3: memref<20x1xf32, #tpu.memory_space<vmem>>, %arg4: memref<20x20xf32, #tpu.memory_space<vmem>>, %arg5: memref<20x1xf32, #tpu.memory_space<vmem>>, %arg6: memref<20x20xf32, #tpu.memory_space<vmem>>, %arg7: memref<20x1xf32, #tpu.memory_space<vmem>>, %arg8: memref<20x20xf32, #tpu.memory_space<vmem>>, %arg9: memref<1x20xf32, #tpu.memory_space<vmem>>, %arg10: memref<128x20xf32, #tpu.memory_space<vmem>>) attributes {dimension_semantics = [#tpu.dimension_semantics<parallel>], iteration_bounds = array<i64: 2>, scalar_prefetch = 0 : i64, scratch_operands = 0 : i64, tpu.core_type = #tpu.core_type<tc>, window_params = [{transform_indices = @transform_0, window_bounds = array<i64: 128, 4>}, {pipeline_mode = #tpu.pipeline_mode<synchronous>, transform_indices = @transform_1, window_bounds = array<i64: 20, 4>}, {pipeline_mode = #tpu.pipeline_mode<synchronous>, transform_indices = @transform_2, window_bounds = array<i64: 20, 1>}, {pipeline_mode = #tpu.pipeline_mode<synchronous>, transform_indices = @transform_3, window_bounds = array<i64: 20, 20>}, {pipeline_mode = #tpu.pipeline_mode<synchronous>, transform_indices = @transform_4, window_bounds = array<i64: 20, 1>}, {pipeline_mode = #tpu.pipeline_mode<synchronous>, transform_indices = @transform_5, window_bounds = array<i64: 20, 20>}, {pipeline_mode = #tpu.pipeline_mode<synchronous>, transform_indices = @transform_6, window_bounds = array<i64: 20, 1>}, {pipeline_mode = #tpu.pipeline_mode<synchronous>, transform_indices = @transform_7, window_bounds = array<i64: 20, 20>}, {pipeline_mode = #tpu.pipeline_mode<synchronous>, transform_indices = @transform_8, window_bounds = array<i64: 1, 20>}, {transform_indices = @transform_9, window_bounds = array<i64: 128, 20>}]} {
    %c0 = arith.constant 0 : index
    %c0_0 = arith.constant 0 : index
    %0 = vector.load %arg1[%c0, %c0_0] : memref<128x4xf32, #tpu.memory_space<vmem>>, vector<128x4xf32>
    %c0_1 = arith.constant 0 : index
    %c0_2 = arith.constant 0 : index
    %1 = vector.load %arg2[%c0_1, %c0_2] : memref<20x4xf32, #tpu.memory_space<vmem>>, vector<20x4xf32>
    %cst = arith.constant dense<0.000000e+00> : vector<20x128xf32>
    %2 = tpu.matmul %1, %0, %cst {dimension_numbers = #tpu.dot_dimension_numbers<[1], [1], [0], [0], [0, 0, 1, 0], [], []>} : vector<20x4xf32>, vector<128x4xf32>, vector<20x128xf32> -> vector<20x128xf32>
    %c0_3 = arith.constant 0 : index
    %c0_4 = arith.constant 0 : index
    %3 = vector.load %arg3[%c0_3, %c0_4] : memref<20x1xf32, #tpu.memory_space<vmem>>, vector<20x1xf32>
    %4 = vector.broadcast %3 : vector<20x1xf32> to vector<20x128xf32>
    %5 = arith.addf %2, %4 : vector<20x128xf32>
    %cst_5 = arith.constant 2.000000e+01 : f32
    %6 = vector.broadcast %cst_5 : f32 to vector<20x128xf32>
    %7 = arith.cmpf ogt, %5, %6 : vector<20x128xf32>
    %8 = math.exp %5 : vector<20x128xf32>
    %9 = math.log1p %8 : vector<20x128xf32>
    %10 = arith.select %7, %5, %9 : vector<20x128xi1>, vector<20x128xf32>
    %c0_6 = arith.constant 0 : index
    %c0_7 = arith.constant 0 : index
    %11 = vector.load %arg4[%c0_6, %c0_7] : memref<20x20xf32, #tpu.memory_space<vmem>>, vector<20x20xf32>
    %cst_8 = arith.constant dense<0.000000e+00> : vector<20x128xf32>
    %12 = tpu.matmul %11, %10, %cst_8 {dimension_numbers = #tpu.dot_dimension_numbers<[1], [0], [0], [1], [0, 0, 1, 1], [], []>} : vector<20x20xf32>, vector<20x128xf32>, vector<20x128xf32> -> vector<20x128xf32>
    %c0_9 = arith.constant 0 : index
    %c0_10 = arith.constant 0 : index
    %13 = vector.load %arg5[%c0_9, %c0_10] : memref<20x1xf32, #tpu.memory_space<vmem>>, vector<20x1xf32>
    %14 = vector.broadcast %13 : vector<20x1xf32> to vector<20x128xf32>
    %15 = arith.addf %12, %14 : vector<20x128xf32>
    %cst_11 = arith.constant 2.000000e+01 : f32
    %16 = vector.broadcast %cst_11 : f32 to vector<20x128xf32>
    %17 = arith.cmpf ogt, %15, %16 : vector<20x128xf32>
    %18 = math.exp %15 : vector<20x128xf32>
    %19 = math.log1p %18 : vector<20x128xf32>
    %20 = arith.select %17, %15, %19 : vector<20x128xi1>, vector<20x128xf32>
    %c0_12 = arith.constant 0 : index
    %c0_13 = arith.constant 0 : index
    %21 = vector.load %arg6[%c0_12, %c0_13] : memref<20x20xf32, #tpu.memory_space<vmem>>, vector<20x20xf32>
    %cst_14 = arith.constant dense<0.000000e+00> : vector<20x128xf32>
    %22 = tpu.matmul %21, %20, %cst_14 {dimension_numbers = #tpu.dot_dimension_numbers<[1], [0], [0], [1], [0, 0, 1, 1], [], []>} : vector<20x20xf32>, vector<20x128xf32>, vector<20x128xf32> -> vector<20x128xf32>
    %c0_15 = arith.constant 0 : index
    %c0_16 = arith.constant 0 : index
    %23 = vector.load %arg7[%c0_15, %c0_16] : memref<20x1xf32, #tpu.memory_space<vmem>>, vector<20x1xf32>
    %24 = vector.broadcast %23 : vector<20x1xf32> to vector<20x128xf32>
    %25 = arith.addf %22, %24 : vector<20x128xf32>
    %cst_17 = arith.constant 2.000000e+01 : f32
    %26 = vector.broadcast %cst_17 : f32 to vector<20x128xf32>
    %27 = arith.cmpf ogt, %25, %26 : vector<20x128xf32>
    %28 = math.exp %25 : vector<20x128xf32>
    %29 = math.log1p %28 : vector<20x128xf32>
    %30 = arith.select %27, %25, %29 : vector<20x128xi1>, vector<20x128xf32>
    %c0_18 = arith.constant 0 : index
    %c0_19 = arith.constant 0 : index
    %31 = vector.load %arg8[%c0_18, %c0_19] : memref<20x20xf32, #tpu.memory_space<vmem>>, vector<20x20xf32>
    %cst_20 = arith.constant dense<0.000000e+00> : vector<128x20xf32>
    %32 = tpu.matmul %30, %31, %cst_20 {dimension_numbers = #tpu.dot_dimension_numbers<[0], [0], [1], [1], [0, 1, 1, 1], [], []>} : vector<20x128xf32>, vector<20x20xf32>, vector<128x20xf32> -> vector<128x20xf32>
    %c0_21 = arith.constant 0 : index
    %c0_22 = arith.constant 0 : index
    %33 = vector.load %arg9[%c0_21, %c0_22] : memref<1x20xf32, #tpu.memory_space<vmem>>, vector<1x20xf32>
    %34 = vector.broadcast %33 : vector<1x20xf32> to vector<128x20xf32>
    %35 = arith.addf %32, %34 : vector<128x20xf32>
    %c0_23 = arith.constant 0 : index
    %c0_24 = arith.constant 0 : index
    %36 = vector.load %arg10[%c0_23, %c0_24] : memref<128x20xf32, #tpu.memory_space<vmem>>, vector<128x20xf32>
    tpu.vector_store %arg10[%c0_23, %c0_24], %35 {strides = array<i32>} : memref<128x20xf32, #tpu.memory_space<vmem>>, vector<128x20xf32>,
    return
  }
  func.func @transform_0(%arg0: i32) -> (i32, i32) {
    %c0_i32 = arith.constant 0 : i32
    %c0_i32_0 = arith.constant 0 : i32
    return %arg0, %c0_i32 : i32, i32
  }
  func.func @transform_1(%arg0: i32) -> (i32, i32) {
    %c0_i32 = arith.constant 0 : i32
    %c0_i32_0 = arith.constant 0 : i32
    %c0_i32_1 = arith.constant 0 : i32
    return %c0_i32, %c0_i32_0 : i32, i32
  }
  func.func @transform_2(%arg0: i32) -> (i32, i32) {
    %c0_i32 = arith.constant 0 : i32
    %c0_i32_0 = arith.constant 0 : i32
    %c0_i32_1 = arith.constant 0 : i32
    return %c0_i32, %c0_i32_0 : i32, i32
  }
  func.func @transform_3(%arg0: i32) -> (i32, i32) {
    %c0_i32 = arith.constant 0 : i32
    %c0_i32_0 = arith.constant 0 : i32
    %c0_i32_1 = arith.constant 0 : i32
    return %c0_i32, %c0_i32_0 : i32, i32
  }
  func.func @transform_4(%arg0: i32) -> (i32, i32) {
    %c0_i32 = arith.constant 0 : i32
    %c0_i32_0 = arith.constant 0 : i32
    %c0_i32_1 = arith.constant 0 : i32
    return %c0_i32, %c0_i32_0 : i32, i32
  }
  func.func @transform_5(%arg0: i32) -> (i32, i32) {
    %c0_i32 = arith.constant 0 : i32
    %c0_i32_0 = arith.constant 0 : i32
    %c0_i32_1 = arith.constant 0 : i32
    return %c0_i32, %c0_i32_0 : i32, i32
  }
  func.func @transform_6(%arg0: i32) -> (i32, i32) {
    %c0_i32 = arith.constant 0 : i32
    %c0_i32_0 = arith.constant 0 : i32
    %c0_i32_1 = arith.constant 0 : i32
    return %c0_i32, %c0_i32_0 : i32, i32
  }
  func.func @transform_7(%arg0: i32) -> (i32, i32) {
    %c0_i32 = arith.constant 0 : i32
    %c0_i32_0 = arith.constant 0 : i32
    %c0_i32_1 = arith.constant 0 : i32
    return %c0_i32, %c0_i32_0 : i32, i32
  }
  func.func @transform_8(%arg0: i32) -> (i32, i32) {
    %c0_i32 = arith.constant 0 : i32
    %c0_i32_0 = arith.constant 0 : i32
    %c0_i32_1 = arith.constant 0 : i32
    return %c0_i32, %c0_i32_0 : i32, i32
  }
  func.func @transform_9(%arg0: i32) -> (i32, i32) {
    %c0_i32 = arith.constant 0 : i32
    %c0_i32_0 = arith.constant 0 : i32
    return %arg0, %c0_i32 : i32, i32
  }
}

</mosaic_0001>

<bundles_post_ra>
// kernel: model_latent_f.1
= control target key start
LH: loop header
LB: loop body
LE: loop exit
PB: predicated region body
PF: predicated region fallthrough
CT: control target
= control target key end

     0   :  { %s1483_s30 = smov 0   ;;  %s1710_s0 = inlined_call_operand.vmem [shape: f32[256,4], index: 0, kind: input, shape index: {}]   ;;  %s1711_s1 = inlined_call_operand.vmem [shape: f32[20,4], index: 1, kind: input, shape index: {}]   ;;  %s1712_s2 = inlined_call_operand.vmem [shape: f32[20,1], index: 2, kind: input, shape index: {}]   ;;  %s1713_s3 = inlined_call_operand.vmem [shape: f32[20,20], index: 3, kind: input, shape index: {}]   ;;  %s1714_s4 = inlined_call_operand.vmem [shape: f32[20,1], index: 4, kind: input, shape index: {}]   ;;  %s1715_s5 = inlined_call_operand.vmem [shape: f32[20,20], index: 5, kind: input, shape index: {}]   ;;  %s1716_s6 = inlined_call_operand.vmem [shape: f32[20,1], index: 6, kind: input, shape index: {}]   ;;  %s1717_s7 = inlined_call_operand.vmem [shape: f32[20,20], index: 7, kind: input, shape index: {}]   ;;  %s1718_s8 = inlined_call_operand.vmem [shape: f32[1,20], index: 8, kind: input, shape index: {}]   ;;  %s1719_s9 = inlined_call_operand.vmem [shape: f32[256,20], index: 9, kind: output, shape index: {}]  }
   0x1 LB: > { %s1166_s10 = sadd.s32 4294967295, %s1428_s30   ;;  %p1170_p0 = scmp.ge.s32.totalorder %s1428_s30, 1  ;;  %s1428_s30 = sphi %s1483_s30, %s19_s30  }
   0x2   : > { %p288_p1 = scmp.lt.s32.totalorder %s1428_s30, 3 }
   0x4   : > { %p289_p2 = pnand %p1170_p0, %p288_p1 }
   0x5   : > { %s1171_s11 = sshll.u32 (!%p289_p2), %s1166_s10, 4 }
   0x6   : > { %292 = sbr.rel (%p289_p2) target bundleno = 1181 (0x49d), region = 56  ;;  %p325_p3 = scmp.lt.s32.totalorder (!%p289_p2), %s1171_s11, 31 }
   0xb   : > { %v1430_v0 = vmov 0.0   ;;  %vm1431_vm0 = vmmov 0   ;;  %v357_v1 = vld [vmem:[%s1712_s2 + $0x10] sm:$0xf]  ;;  %v1432_v2 = vmov 0   ;;  %v355_v3 = vld [vmem:[%s1712_s2] sm:$0xff] }
   0xc   : > { %1272 = vmatprep.subr.mxu0 %v1430_v0  ;;  %1304 = vmatprep.mubr.msk.f32.mxu0 %vm1431_vm0, %v1430_v0  ;;  %s1721_s11 = smov (!%p325_p3, %s1171_s11), 31  ;;  %v356_v4 = vld [vmem:[%s1712_s2 + $0x8] sm:$0xff]  ;;  %v555_v5 = vld [vmem:[%s1714_s4 + $0x10] sm:$0xf]  ;;  %vm373_vm1 = vcmask 31744   ;;  %v553_v8 = vld [vmem:[%s1714_s4] sm:$0xff] }
   0xd   : > { %1384 = vset.pattern.permute.xlu0 %v1432_v2  ;;  %1385 = vset.pattern.permute.xlu1 %v1432_v2  ;;  %s1172_s20 = sshll.u32 %s1721_s11, 3  ;;  %v554_v7 = vld [vmem:[%s1714_s4 + $0x8] sm:$0xff]  ;;  %v707_v10 = vld [vmem:[%s1716_s6] sm:$0xff]  ;;  %v709_v13 = vld [vmem:[%s1716_s6 + $0x10] sm:$0xf]  ;;  %vm581_vm3 = vcmask 1043456  }
   0xe   : > { %370 = vperm.xlu0 %1384, %v357_v1   ;;  %360 = vperm.xlu1 %1385, %v355_v3   ;;  %s1517_s23 = scalar_lea.vmem %s1710_s0, %s1172_s20  ;;  %v708_v11 = vld [vmem:[%s1716_s6 + $0x8] sm:$0xff]  ;;  %v352_v27 = vld [vmem:[%s1711_s1] sm:$0xff]  ;;  %v354_v29 = vld [vmem:[%s1711_s1 + $0x10] sm:$0xf]  ;;  %vm571_vm9 = vcmask 162816   ;;  %s1673_s26 = scalar_lea.vmem %s1719_s9, %s1172_s20 }
   0xf   : > { %1313 = vmatprep.subr.mxu1 %v1430_v0  ;;  %1319 = vmatprep.mubr.msk.f32.mxu1 %vm1431_vm0, %v1430_v0  ;;  %v351_v6 = vld [vmem:[%s1517_s23 + $0x78] sm:$0xff]  ;;  %v350_v9 = vld [vmem:[%s1517_s23 + $0x70] sm:$0xff]  ;;  %v349_v12 = vld [vmem:[%s1517_s23 + $0x68] sm:$0xff] }
  0x10   : > { %1273 = vmatpush3.xpose.msk.msra.mxu0 %vm373_vm1, %v351_v6  ;;  %v348_v14 = vld [vmem:[%s1517_s23 + $0x60] sm:$0xff]  ;;  %v347_v15 = vld [vmem:[%s1517_s23 + $0x58] sm:$0xff]  ;;  %v346_v16 = vld [vmem:[%s1517_s23 + $0x50] sm:$0xff] }
  0x11   : > { %1274 = vmatprep.subr.mxu0 %v1430_v0  ;;  %v345_v17 = vld [vmem:[%s1517_s23 + $0x48] sm:$0xff]  ;;  %v344_v18 = vld [vmem:[%s1517_s23 + $0x40] sm:$0xff]  ;;  %v343_v19 = vld [vmem:[%s1517_s23 + $0x38] sm:$0xff] }
  0x12   : > { %365 = vperm.xlu0 %1384, %v356_v4   ;;  %568 = vperm.xlu1 %1385, %v555_v5   ;;  %v342_v20 = vld [vmem:[%s1517_s23 + $0x30] sm:$0xff]  ;;  %v341_v21 = vld [vmem:[%s1517_s23 + $0x28] sm:$0xff]  ;;  %v340_v22 = vld [vmem:[%s1517_s23 + $0x20] sm:$0xff] }
  0x13   : > { %v339_v23 = vld [vmem:[%s1517_s23 + $0x18] sm:$0xff]  ;;  %v338_v24 = vld [vmem:[%s1517_s23 + $0x10] sm:$0xff]  ;;  %v337_v25 = vld [vmem:[%s1517_s23 + $0x8] sm:$0xff] }
  0x14   : > { %1275 = vmatpush3.xpose.msk.msra.mxu0 %vm373_vm1, %v350_v9  ;;  %v336_v26 = vld [vmem:[%s1517_s23] sm:$0xff]  ;;  %v353_v28 = vld [vmem:[%s1711_s1 + $0x8] sm:$0xff] }
  0x15   : > { %1276 = vmatprep.subr.mxu0 %v1430_v0 }
  0x16   : > { %563 = vperm.xlu0 %1384, %v554_v7   ;;  %558 = vperm.xlu1 %1385, %v553_v8  }
  0x18   : > { %1277 = vmatpush3.xpose.msk.msra.mxu0 %vm373_vm1, %v349_v12 }
  0x19   : > { %1278 = vmatprep.subr.mxu0 %v1430_v0 }
  0x1a   : > { %712 = vperm.xlu0 %1384, %v707_v10   ;;  %717 = vperm.xlu1 %1385, %v708_v11   ;;  %v550_v11 = vld [vmem:[%s1713_s3] sm:$0xff] }
  0x1c   : > { %1279 = vmatpush3.xpose.msk.msra.mxu0 %vm373_vm1, %v348_v14  ;;  %v552_v14 = vld [vmem:[%s1713_s3 + $0x10] sm:$0xf] }
  0x1d   : > { %1280 = vmatprep.subr.mxu0 %v1430_v0 }
  0x1e   : > { %722 = vperm.xlu0 %1384, %v709_v13   ;;  %v551_v13 = vld [vmem:[%s1713_s3 + $0x8] sm:$0xff] }
  0x20   : > { %1281 = vmatpush3.xpose.msk.msra.mxu0 %vm373_vm1, %v347_v15 }
  0x21   : > { %1282 = vmatprep.subr.mxu0 %v1430_v0 }
  0x24   : > { %1283 = vmatpush3.xpose.msk.msra.mxu0 %vm373_vm1, %v346_v16 }
  0x25   : > { %1284 = vmatprep.subr.mxu0 %v1430_v0 }
  0x28   : > { %1285 = vmatpush3.xpose.msk.msra.mxu0 %vm373_vm1, %v345_v17 }
  0x29   : > { %1286 = vmatprep.subr.mxu0 %v1430_v0 }
  0x2c   : > { %1287 = vmatpush3.xpose.msk.msra.mxu0 %vm373_vm1, %v344_v18 }
  0x2d   : > { %1288 = vmatprep.subr.mxu0 %v1430_v0 }
  0x30   : > { %1289 = vmatpush3.xpose.msk.msra.mxu0 %vm373_vm1, %v343_v19 }
  0x31   : > { %1290 = vmatprep.subr.mxu0 %v1430_v0 }
  0x34   : > { %1291 = vmatpush3.xpose.msk.msra.mxu0 %vm373_vm1, %v342_v20 }
  0x35   : > { %1292 = vmatprep.subr.mxu0 %v1430_v0 }
  0x38   : > { %1293 = vmatpush3.xpose.msk.msra.mxu0 %vm373_vm1, %v341_v21 }
  0x39   : > { %1294 = vmatprep.subr.mxu0 %v1430_v0 }
  0x3c   : > { %1295 = vmatpush3.xpose.msk.msra.mxu0 %vm373_vm1, %v340_v22 }
  0x3d   : > { %1296 = vmatprep.subr.mxu0 %v1430_v0 }
  0x40   : > { %1297 = vmatpush3.xpose.msk.msra.mxu0 %vm373_vm1, %v339_v23 }
  0x41   : > { %1298 = vmatprep.subr.mxu0 %v1430_v0 }
  0x44   : > { %1299 = vmatpush3.xpose.msk.msra.mxu0 %vm373_vm1, %v338_v24 }
  0x45   : > { %1300 = vmatprep.subr.mxu0 %v1430_v0 }
  0x48   : > { %1301 = vmatpush3.xpose.msk.msra.mxu0 %vm373_vm1, %v337_v25 }
  0x49   : > { %1302 = vmatprep.subr.mxu0 %v1430_v0 }
  0x4c   : > { %1303 = vmatpush3.xpose.msk.msra.mxu0 %vm373_vm1, %v336_v26 }
  0x4f   : > { %1305 = vmatmul.mubr.msk.f32.vlgmr.msra.gmra.mxu0 %vm373_vm1, %v352_v27 }
  0x50   : > { %1307 = vmatprep.mubr.msk.f32.mxu0 %vm1431_vm0, %v1430_v0 }
  0x53   : > { %1308 = vmatmul.mubr.msk.f32.gmra.mxu0 %vm373_vm1, %v353_v28 }
  0x54   : > { %1310 = vmatprep.mubr.msk.f32.mxu0 %vm1431_vm0, %v1430_v0 }
  0x57   : > { %1311 = vmatmul.mubr.msk.f32.gmra.mxu0 %vm373_vm1, %v354_v29 }
  0x89   : > { %v371_v30 = vpop.permute.xlu0 %370  ;;  %v361_v31 = vpop.permute.xlu1 %360 }
  0x8d   : > { %v366_v36 = vpop.permute.xlu0 %365  ;;  %v569_v15 = vpop.permute.xlu1 %568 }
  0x91   : > { %v559_v16 = vpop.permute.xlu1 %558  ;;  %v564_v21 = vpop.permute.xlu0 %563 }
 0x10f   : > { %v497_v32 = vpop.f32.mrf.mxu0 }
 0x110   : > { %v498_v33 = vadd.f32 %v497_v32, %v361_v31 }
 0x111   : > { %v1306_v34 = vpop.f32.mrf.mxu0 }
 0x112   : > { %v514_v35 = vmul.f32 1.442695, %v498_v33  ;;  %vm511_vm8 = vcmp.gt.f32.partialorder %v498_v33, 20.0 }
 0x113   : > { %v502_v37 = vpop.f32.mrf.mxu0 }
 0x114   : > { %v503_v38 = vadd.f32 %v502_v37, %v366_v36  ;;  %1386 = vpow2.f32 %v514_v35 }
 0x115   : > { %v1309_v39 = vpop.f32.mrf.mxu0 }
 0x116   : > { %v516_v40 = vmul.f32 1.442695, %v503_v38  ;;  %vm512_vm7 = vcmp.gt.f32.partialorder %v503_v38, 20.0 }
 0x117   : > { %v507_v41 = vpop.f32.mrf.mxu0 }
 0x118   : > { %1388 = vpow2.f32 %v516_v40  ;;  %v508_v42 = vadd.f32 %v507_v41, %v371_v30 }
 0x119   : > { %v1312_v43 = vpop.f32.mrf.mxu0 }
 0x11a   : > { %v518_v44 = vmul.f32 1.442695, %v508_v42  ;;  %vm513_vm5 = vcmp.gt.f32.partialorder %v508_v42, 20.0 }
 0x11c   : > { %1390 = vpow2.f32 %v518_v44 }
 0x121   : > { %v1387_v45 = vpop.eup %1386 }
 0x122   : > { %v520_v48 = vadd.f32 1.0, %v1387_v45  ;;  %v523_v53 = vmul.f32 -0.5, %v1387_v45  ;;  %v526_v63 = vand.u32 2147483647, %v1387_v45 }
 0x124   : > { %v524_v61 = vadd.f32 1.0, %v523_v53  ;;  %vm527_vm6 = vcmp.lt.f32.partialorder %v526_v63, 0.0004427343  ;;  %v858_v63 = vld [vmem:[%s1717_s7 + $0x10] sm:$0xf] }
 0x125   : > { %v1389_v46 = vpop.eup %1388 }
 0x126   : > { %v529_v47 = vadd.f32 1.0, %v1389_v46  ;;  %v532_v52 = vmul.f32 -0.5, %v1389_v46  ;;  %v535_v59 = vand.u32 2147483647, %v1389_v46  ;;  %v525_v7 = vmul.f32 %v1387_v45, %v524_v61  ;;  %v705_v61 = vld [vmem:[%s1715_s5 + $0x8] sm:$0xff] }
 0x128   : > { %1392 = vlog2.f32 %v529_v47  ;;  %v533_v56 = vadd.f32 1.0, %v532_v52  ;;  %vm536_vm4 = vcmp.lt.f32.partialorder %v535_v59, 0.0004427343  ;;  %v704_v59 = vld [vmem:[%s1715_s5] sm:$0xff] }
 0x129   : > { %v1391_v49 = vpop.eup %1390  ;;  %1394 = vlog2.f32 %v520_v48 }
 0x12a   : > { %v538_v50 = vadd.f32 1.0, %v1391_v49  ;;  %v541_v51 = vmul.f32 -0.5, %v1391_v49  ;;  %v544_v58 = vand.u32 2147483647, %v1391_v49  ;;  %v534_v3 = vmul.f32 %v1389_v46, %v533_v56 }
 0x12c   : > { %1396 = vlog2.f32 %v538_v50  ;;  %v542_v55 = vadd.f32 1.0, %v541_v51  ;;  %vm545_vm2 = vcmp.lt.f32.partialorder %v544_v58, 0.0004427343 }
 0x12e   : > { %v543_v2 = vmul.f32 %v1391_v49, %v542_v55 }
 0x135   : > { %v1393_v54 = vpop.eup %1392 }
 0x136   : > { %v1395_v57 = vpop.eup %1394  ;;  %v531_v60 = vmul.f32 0.6931472, %v1393_v54 }
 0x137   : > { %v522_v4 = vmul.f32 0.6931472, %v1395_v57 }
 0x138   : > { %v537_v6 = vsel %vm536_vm4, %v534_v3, %v531_v60 }
 0x139   : > { %v1397_v62 = vpop.eup %1396  ;;  %v528_v9 = vsel %vm527_vm6, %v525_v7, %v522_v4  ;;  %v548_v10 = vsel %vm512_vm7, %v503_v38, %v537_v6 }
 0x13a   : > { %v540_v1 = vmul.f32 0.6931472, %v1397_v62  ;;  %v547_v12 = vsel %vm511_vm8, %v498_v33, %v528_v9  ;;  %v706_v62 = vld [vmem:[%s1715_s5 + $0x10] sm:$0xf] }
 0x13c   : > { %v546_v5 = vsel %vm545_vm2, %v543_v2, %v540_v1  ;;  %v713_v1 = vpop.permute.xlu0 %712 }
 0x13d   : > { %v549_v8 = vsel %vm513_vm5, %v508_v42, %v546_v5 }
 0x13e   : > { %1314 = vmatpush3.msk.msra.mxu1 %vm581_vm3, %v549_v8 }
 0x13f   : > { %1315 = vmatprep.subr.mxu1 %v1430_v0 }
 0x140   : > { %1316 = vmatpush3.msra.mxu1 %v548_v10  ;;  %v723_v10 = vpop.permute.xlu0 %722 }
 0x141   : > { %1317 = vmatprep.subr.mxu1 %v1430_v0 }
 0x142   : > { %1318 = vmatpush3.msra.mxu1 %v547_v12 }
 0x143   : > { %1320 = vmatmul.mubr.msk.f32.vlgmr.msra.gmra.mxu1 %vm571_vm9, %v550_v11  ;;  %1328 = vmatprep.subr.mxu1 %v1430_v0 }
 0x144   : > { %1322 = vmatprep.mubr.msk.f32.mxu1 %vm1431_vm0, %v1430_v0 }
 0x147   : > { %1323 = vmatmul.mubr.msk.f32.gmra.mxu1 %vm571_vm9, %v551_v13 }
 0x148   : > { %1325 = vmatprep.mubr.msk.f32.mxu1 %vm1431_vm0, %v1430_v0 }
 0x14b   : > { %1326 = vmatmul.mubr.msk.f32.gmra.mxu1 %vm571_vm9, %v552_v14 }
 0x14c   : > { %1334 = vmatprep.mubr.msk.f32.mxu1 %vm1431_vm0, %v1430_v0 }
 0x203   : > { %v651_v17 = vpop.f32.mrf.mxu1 }
 0x204   : > { %v652_v18 = vadd.f32 %v651_v17, %v559_v16 }
 0x205   : > { %v1321_v19 = vpop.f32.mrf.mxu1 }
 0x206   : > { %v668_v20 = vmul.f32 1.442695, %v652_v18  ;;  %vm665_vm15 = vcmp.gt.f32.partialorder %v652_v18, 20.0 }
 0x207   : > { %v656_v22 = vpop.f32.mrf.mxu1 }
 0x208   : > { %v657_v23 = vadd.f32 %v656_v22, %v564_v21  ;;  %1398 = vpow2.f32 %v668_v20 }
 0x209   : > { %v1324_v24 = vpop.f32.mrf.mxu1 }
 0x20a   : > { %v670_v25 = vmul.f32 1.442695, %v657_v23  ;;  %vm666_vm14 = vcmp.gt.f32.partialorder %v657_v23, 20.0 }
 0x20b   : > { %v661_v26 = vpop.f32.mrf.mxu1 }
 0x20c   : > { %1400 = vpow2.f32 %v670_v25  ;;  %v662_v27 = vadd.f32 %v661_v26, %v569_v15 }
 0x20d   : > { %v1327_v28 = vpop.f32.mrf.mxu1 }
 0x20e   : > { %v672_v29 = vmul.f32 1.442695, %v662_v27  ;;  %vm667_vm12 = vcmp.gt.f32.partialorder %v662_v27, 20.0 }
 0x210   : > { %1402 = vpow2.f32 %v672_v29 }
 0x215   : > { %v1399_v30 = vpop.eup %1398 }
 0x216   : > { %v674_v33 = vadd.f32 1.0, %v1399_v30  ;;  %v677_v38 = vmul.f32 -0.5, %v1399_v30  ;;  %v680_v48 = vand.u32 2147483647, %v1399_v30 }
 0x218   : > { %v678_v46 = vadd.f32 1.0, %v677_v38  ;;  %vm681_vm13 = vcmp.lt.f32.partialorder %v680_v48, 0.0004427343 }
 0x219   : > { %v1401_v31 = vpop.eup %1400 }
 0x21a   : > { %v683_v32 = vadd.f32 1.0, %v1401_v31  ;;  %v686_v37 = vmul.f32 -0.5, %v1401_v31  ;;  %v689_v44 = vand.u32 2147483647, %v1401_v31  ;;  %v679_v55 = vmul.f32 %v1399_v30, %v678_v46  ;;  %v857_v30 = vld [vmem:[%s1717_s7 + $0x8] sm:$0xff] }
 0x21c   : > { %1404 = vlog2.f32 %v683_v32  ;;  %v687_v41 = vadd.f32 1.0, %v686_v37  ;;  %vm690_vm11 = vcmp.lt.f32.partialorder %v689_v44, 0.0004427343 }
 0x21d   : > { %v1403_v34 = vpop.eup %1402  ;;  %1406 = vlog2.f32 %v674_v33 }
 0x21e   : > { %v692_v35 = vadd.f32 1.0, %v1403_v34  ;;  %v695_v36 = vmul.f32 -0.5, %v1403_v34  ;;  %v698_v43 = vand.u32 2147483647, %v1403_v34  ;;  %v688_v51 = vmul.f32 %v1401_v31, %v687_v41  ;;  %v856_v31 = vld [vmem:[%s1717_s7] sm:$0xff] }
 0x220   : > { %1408 = vlog2.f32 %v692_v35  ;;  %v696_v40 = vadd.f32 1.0, %v695_v36  ;;  %vm699_vm10 = vcmp.lt.f32.partialorder %v698_v43, 0.0004427343 }
 0x222   : > { %v697_v50 = vmul.f32 %v1403_v34, %v696_v40 }
 0x229   : > { %v1405_v39 = vpop.eup %1404 }
 0x22a   : > { %v1407_v42 = vpop.eup %1406  ;;  %v685_v45 = vmul.f32 0.6931472, %v1405_v39 }
 0x22b   : > { %v676_v52 = vmul.f32 0.6931472, %v1407_v42 }
 0x22c   : > { %v691_v54 = vsel %vm690_vm11, %v688_v51, %v685_v45 }
 0x22d   : > { %v1409_v47 = vpop.eup %1408  ;;  %v682_v57 = vsel %vm681_vm13, %v679_v55, %v676_v52  ;;  %v702_v58 = vsel %vm666_vm14, %v657_v23, %v691_v54 }
 0x22e   : > { %v694_v49 = vmul.f32 0.6931472, %v1409_v47  ;;  %v701_v60 = vsel %vm665_vm15, %v652_v18, %v682_v57 }
 0x230   : > { %v700_v53 = vsel %vm699_vm10, %v697_v50, %v694_v49 }
 0x231   : > { %v703_v56 = vsel %vm667_vm12, %v662_v27, %v700_v53 }
 0x232   : > { %1329 = vmatpush3.msk.msra.mxu1 %vm581_vm3, %v703_v56 }
 0x233   : > { %1330 = vmatprep.subr.mxu1 %v1430_v0 }
 0x234   : > { %1331 = vmatpush3.msra.mxu1 %v702_v58 }
 0x235   : > { %1332 = vmatprep.subr.mxu1 %v1430_v0 }
 0x236   : > { %1333 = vmatpush3.msra.mxu1 %v701_v60 }
 0x237   : > { %1335 = vmatmul.mubr.msk.f32.vlgmr.msra.gmra.mxu1 %vm571_vm9, %v704_v59  ;;  %1343 = vmatprep.subr.msk.mxu1 %vm581_vm3, %v858_v63 }
 0x238   : > { %1337 = vmatprep.mubr.msk.f32.mxu1 %vm1431_vm0, %v1430_v0  ;;  %1344 = vmatpush3.msk.msra.mxu1 %vm581_vm3, %v858_v63  ;;  %v1202_v63 = vld [vmem:[%s1718_s8] ss:$0 sm:$0xff] }
 0x239   : > { %1345 = vmatprep.subr.mxu1 %v857_v30 }
 0x23a   : > { %1346 = vmatpush3.msra.mxu1 %v857_v30 }
 0x23b   : > { %1338 = vmatmul.mubr.msk.f32.gmra.mxu1 %vm571_vm9, %v705_v61  ;;  %1347 = vmatprep.subr.mxu1 %v856_v31 }
 0x23c   : > { %1340 = vmatprep.mubr.msk.f32.mxu1 %vm1431_vm0, %v1430_v0  ;;  %v718_v0 = vpop.permute.xlu1 %717  ;;  %1348 = vmatpush3.msra.mxu1 %v856_v31 }
 0x23f   : > { %1341 = vmatmul.mubr.msk.f32.gmra.mxu1 %vm571_vm9, %v706_v62 }
 0x2f7   : > { %v803_v2 = vpop.f32.mrf.mxu1 }
 0x2f8   : > { %v804_v3 = vadd.f32 %v803_v2, %v713_v1 }
 0x2f9   : > { %v1336_v4 = vpop.f32.mrf.mxu1 }
 0x2fa   : > { %v820_v5 = vmul.f32 1.442695, %v804_v3  ;;  %vm817_vm1 = vcmp.gt.f32.partialorder %v804_v3, 20.0 }
 0x2fb   : > { %v808_v6 = vpop.f32.mrf.mxu1 }
 0x2fc   : > { %1410 = vpow2.f32 %v820_v5  ;;  %v809_v7 = vadd.f32 %v808_v6, %v718_v0 }
 0x2fd   : > { %v1339_v8 = vpop.f32.mrf.mxu1 }
 0x2fe   : > { %v822_v9 = vmul.f32 1.442695, %v809_v7  ;;  %vm818_vm3 = vcmp.gt.f32.partialorder %v809_v7, 20.0 }
 0x2ff   : > { %v813_v11 = vpop.f32.mrf.mxu1 }
 0x300   : > { %1412 = vpow2.f32 %v822_v9  ;;  %v814_v12 = vadd.f32 %v813_v11, %v723_v10 }
 0x301   : > { %v1342_v13 = vpop.f32.mrf.mxu1 }
 0x302   : > { %v824_v14 = vmul.f32 1.442695, %v814_v12  ;;  %vm819_vm5 = vcmp.gt.f32.partialorder %v814_v12, 20.0 }
 0x304   : > { %1414 = vpow2.f32 %v824_v14 }
 0x309   : > { %v1411_v15 = vpop.eup %1410 }
 0x30a   : > { %v826_v16 = vadd.f32 1.0, %v1411_v15  ;;  %v829_v20 = vmul.f32 -0.5, %v1411_v15  ;;  %v832_v24 = vand.u32 2147483647, %v1411_v15 }
 0x30c   : > { %1416 = vlog2.f32 %v826_v16  ;;  %v830_v22 = vadd.f32 1.0, %v829_v20  ;;  %vm833_vm0 = vcmp.lt.f32.partialorder %v832_v24, 0.0004427343 }
 0x30d   : > { %v1413_v17 = vpop.eup %1412 }
 0x30e   : > { %v835_v18 = vadd.f32 1.0, %v1413_v17  ;;  %v838_v23 = vmul.f32 -0.5, %v1413_v17  ;;  %v831_v27 = vmul.f32 %v1411_v15, %v830_v22  ;;  %v841_v32 = vand.u32 2147483647, %v1413_v17 }
 0x310   : > { %1418 = vlog2.f32 %v835_v18  ;;  %v839_v28 = vadd.f32 1.0, %v838_v23  ;;  %vm842_vm2 = vcmp.lt.f32.partialorder %v841_v32, 0.0004427343 }
 0x311   : > { %v1415_v19 = vpop.eup %1414 }
 0x312   : > { %v844_v21 = vadd.f32 1.0, %v1415_v19  ;;  %v847_v29 = vmul.f32 -0.5, %v1415_v19  ;;  %v840_v37 = vmul.f32 %v1413_v17, %v839_v28  ;;  %v850_v39 = vand.u32 2147483647, %v1415_v19 }
 0x314   : > { %1420 = vlog2.f32 %v844_v21  ;;  %v848_v38 = vadd.f32 1.0, %v847_v29  ;;  %vm851_vm4 = vcmp.lt.f32.partialorder %v850_v39, 0.0004427343 }
 0x316   : > { %v849_v44 = vmul.f32 %v1415_v19, %v848_v38 }
 0x319   : > { %v1417_v25 = vpop.eup %1416 }
 0x31a   : > { %v828_v26 = vmul.f32 0.6931472, %v1417_v25 }
 0x31c   : > { %v834_v33 = vsel %vm833_vm0, %v831_v27, %v828_v26 }
 0x31d   : > { %v1419_v34 = vpop.eup %1418  ;;  %v853_v35 = vsel %vm817_vm1, %v804_v3, %v834_v33 }
 0x31e   : > { %866 = vxpose.xlu1.b32.start [1/3] (short) %v853_v35, 128  ;;  %v837_v36 = vmul.f32 0.6931472, %v1419_v34 }
 0x320   : > { %v843_v40 = vsel %vm842_vm2, %v840_v37, %v837_v36 }
 0x321   : > { %v1421_v41 = vpop.eup %1420  ;;  %v854_v42 = vsel %vm818_vm3, %v809_v7, %v843_v40 }
 0x322   : > { %867 = vxpose.xlu1.b32.cont [2/3] (short) %v854_v42, 128  ;;  %v846_v43 = vmul.f32 0.6931472, %v1421_v41 }
 0x324   : > { %v852_v45 = vsel %vm851_vm4, %v849_v44, %v846_v43 }
 0x325   : > { %v855_v46 = vsel %vm819_vm5, %v814_v12, %v852_v45 }
 0x326   : > { %868 = vxpose.xlu1.b32.end [3/3] (short) %v855_v46, 128 }
 0x39a   : > { %v882_v47 = vpop.trf.xlu1 }
 0x39b   : > { %1349 = vmatprep.mubr.msk.f32.mxu1 %vm571_vm9, %v882_v47 }
 0x39e   : > { %v883_v48 = vpop.trf.xlu1 }
 0x39f   : > { %1350 = vmatmul.mubr.msk.f32.vlgmr.msra.gmra.mxu1 %vm571_vm9, %v883_v48 }
 0x3a2   : > { %v884_v49 = vpop.trf.xlu1 }
 0x3a3   : > { %1352 = vmatprep.mubr.msk.f32.mxu1 %vm571_vm9, %v884_v49 }
 0x3a6   : > { %v885_v50 = vpop.trf.xlu1 }
 0x3a7   : > { %1353 = vmatmul.mubr.msk.f32.gmra.mxu1 %vm571_vm9, %v885_v50 }
 0x3aa   : > { %v886_v51 = vpop.trf.xlu1 }
 0x3ab   : > { %1355 = vmatprep.mubr.msk.f32.mxu1 %vm571_vm9, %v886_v51 }
 0x3ae   : > { %v887_v52 = vpop.trf.xlu1 }
 0x3af   : > { %1356 = vmatmul.mubr.msk.f32.gmra.mxu1 %vm571_vm9, %v887_v52 }
 0x3b2   : > { %v888_v53 = vpop.trf.xlu1 }
 0x3b3   : > { %1358 = vmatprep.mubr.msk.f32.mxu1 %vm571_vm9, %v888_v53 }
 0x3b6   : > { %v889_v54 = vpop.trf.xlu1 }
 0x3b7   : > { %1359 = vmatmul.mubr.msk.f32.gmra.mxu1 %vm571_vm9, %v889_v54 }
 0x3ba   : > { %v890_v55 = vpop.trf.xlu1 }
 0x3bb   : > { %1361 = vmatprep.mubr.msk.f32.mxu1 %vm571_vm9, %v890_v55 }
 0x3be   : > { %v891_v56 = vpop.trf.xlu1 }
 0x3bf   : > { %1362 = vmatmul.mubr.msk.f32.gmra.mxu1 %vm571_vm9, %v891_v56 }
 0x3c2   : > { %v892_v57 = vpop.trf.xlu1 }
 0x3c3   : > { %1364 = vmatprep.mubr.msk.f32.mxu1 %vm571_vm9, %v892_v57 }
 0x3c6   : > { %v893_v58 = vpop.trf.xlu1 }
 0x3c7   : > { %1365 = vmatmul.mubr.msk.f32.gmra.mxu1 %vm571_vm9, %v893_v58 }
 0x3ca   : > { %v894_v59 = vpop.trf.xlu1 }
 0x3cb   : > { %1367 = vmatprep.mubr.msk.f32.mxu1 %vm571_vm9, %v894_v59 }
 0x3ce   : > { %v895_v60 = vpop.trf.xlu1 }
 0x3cf   : > { %1368 = vmatmul.mubr.msk.f32.gmra.mxu1 %vm571_vm9, %v895_v60 }
 0x3d2   : > { %v896_v61 = vpop.trf.xlu1 }
 0x3d3   : > { %1370 = vmatprep.mubr.msk.f32.mxu1 %vm571_vm9, %v896_v61 }
 0x3d6   : > { %v897_v62 = vpop.trf.xlu1 }
 0x3d7   : > { %1371 = vmatmul.mubr.msk.f32.gmra.mxu1 %vm571_vm9, %v897_v62 }
 0x45f   : > { %v1351_v1 = vpop.f32.mrf.mxu1 }
 0x460   : > { %v1021_v2 = vadd.f32 %v1351_v1, %v1202_v63 }
 0x461   : > { %v1015_v3 = vpop.f32.mrf.mxu1 }
 0x462   : > { %1095 = vst.msk [vmem:[%s1673_s26 + $0x8] sm:$0xff] %vm571_vm9, %v1021_v2  ;;  %v1016_v4 = vadd.f32 %v1202_v63, %v1015_v3 }
 0x464   : > { %1094 = vst.msk [vmem:[%s1673_s26] sm:$0xff] %vm571_vm9, %v1016_v4 }
 0x467   : > { %v1354_v5 = vpop.f32.mrf.mxu1 }
 0x468   : > { %v1031_v0 = vadd.f32 %v1354_v5, %v1202_v63 }
 0x469   : > { %v1025_v6 = vpop.f32.mrf.mxu1 }
 0x46a   : > { %1097 = vst.msk [vmem:[%s1673_s26 + $0x18] sm:$0xff] %vm571_vm9, %v1031_v0  ;;  %v1026_v7 = vadd.f32 %v1202_v63, %v1025_v6 }
 0x46c   : > { %1096 = vst.msk [vmem:[%s1673_s26 + $0x10] sm:$0xff] %vm571_vm9, %v1026_v7 }
 0x46f   : > { %v1357_v8 = vpop.f32.mrf.mxu1 }
 0x470   : > { %v1041_v9 = vadd.f32 %v1357_v8, %v1202_v63 }
 0x471   : > { %v1035_v10 = vpop.f32.mrf.mxu1 }
 0x472   : > { %1099 = vst.msk [vmem:[%s1673_s26 + $0x28] sm:$0xff] %vm571_vm9, %v1041_v9  ;;  %v1036_v11 = vadd.f32 %v1202_v63, %v1035_v10 }
 0x474   : > { %1098 = vst.msk [vmem:[%s1673_s26 + $0x20] sm:$0xff] %vm571_vm9, %v1036_v11 }
 0x477   : > { %v1360_v12 = vpop.f32.mrf.mxu1 }
 0x478   : > { %v1051_v13 = vadd.f32 %v1360_v12, %v1202_v63 }
 0x479   : > { %v1045_v14 = vpop.f32.mrf.mxu1 }
 0x47a   : > { %1101 = vst.msk [vmem:[%s1673_s26 + $0x38] sm:$0xff] %vm571_vm9, %v1051_v13  ;;  %v1046_v15 = vadd.f32 %v1202_v63, %v1045_v14 }
 0x47c   : > { %1100 = vst.msk [vmem:[%s1673_s26 + $0x30] sm:$0xff] %vm571_vm9, %v1046_v15 }
 0x47f   : > { %v1363_v16 = vpop.f32.mrf.mxu1 }
 0x480   : > { %v1061_v17 = vadd.f32 %v1363_v16, %v1202_v63 }
 0x481   : > { %v1055_v18 = vpop.f32.mrf.mxu1 }
 0x482   : > { %1103 = vst.msk [vmem:[%s1673_s26 + $0x48] sm:$0xff] %vm571_vm9, %v1061_v17  ;;  %v1056_v19 = vadd.f32 %v1202_v63, %v1055_v18 }
 0x484   : > { %1102 = vst.msk [vmem:[%s1673_s26 + $0x40] sm:$0xff] %vm571_vm9, %v1056_v19 }
 0x487   : > { %v1366_v20 = vpop.f32.mrf.mxu1 }
 0x488   : > { %v1071_v21 = vadd.f32 %v1366_v20, %v1202_v63 }
 0x489   : > { %v1065_v22 = vpop.f32.mrf.mxu1 }
 0x48a   : > { %1105 = vst.msk [vmem:[%s1673_s26 + $0x58] sm:$0xff] %vm571_vm9, %v1071_v21  ;;  %v1066_v23 = vadd.f32 %v1202_v63, %v1065_v22 }
 0x48c   : > { %1104 = vst.msk [vmem:[%s1673_s26 + $0x50] sm:$0xff] %vm571_vm9, %v1066_v23 }
 0x48f   : > { %v1369_v24 = vpop.f32.mrf.mxu1 }
 0x490   : > { %v1081_v25 = vadd.f32 %v1369_v24, %v1202_v63 }
 0x491   : > { %v1075_v26 = vpop.f32.mrf.mxu1 }
 0x492   : > { %1107 = vst.msk [vmem:[%s1673_s26 + $0x68] sm:$0xff] %vm571_vm9, %v1081_v25  ;;  %v1076_v27 = vadd.f32 %v1202_v63, %v1075_v26 }
 0x494   : > { %1106 = vst.msk [vmem:[%s1673_s26 + $0x60] sm:$0xff] %vm571_vm9, %v1076_v27 }
 0x497   : > { %v1372_v28 = vpop.f32.mrf.mxu1 }
 0x498   : > { %v1091_v29 = vadd.f32 %v1372_v28, %v1202_v63 }
 0x499   : > { %v1085_v30 = vpop.f32.mrf.mxu1 }
 0x49a   : > { %1109 = vst.msk [vmem:[%s1673_s26 + $0x78] sm:$0xff] %vm571_vm9, %v1091_v29  ;;  %v1086_v31 = vadd.f32 %v1202_v63, %v1085_v30 }
 0x49c   : > { %1108 = vst.msk [vmem:[%s1673_s26 + $0x70] sm:$0xff] %vm571_vm9, %v1086_v31 }
 0x49d PF: > { %s19_s30 = sadd.s32 1, %s1428_s30  }
 0x49e   : > { %p16_p4 = scmp.ge.s32.totalorder %s19_s30, 4  }
 0x4a0   :  { %18 = sbr.rel (!%p16_p4) target bundleno = 1 (0x1), region = 86 }

</bundles_post_ra>
